<compile_context>
chip_gen: v7x
topology: tpu7x:2x2x1
jax: 0.10.0
libtpu: 0.0.40
codegen_flags: <defaults>
</compile_context>

<pallas_src>
import functools

import jax
import jax.numpy as jnp
from jax.experimental import pallas as pl
from jax.experimental.pallas import tpu as pltpu


def _round_up(x, m):
    return (x + m - 1) // m * m


def _ffn_kernel(*refs, apply_dropout, inv_keep):
    if apply_dropout:
        x_ref, w1_ref, b1_ref, w2_ref, b2_ref, mask_ref, o_ref, acc_ref = refs
    else:
        x_ref, w1_ref, b1_ref, w2_ref, b2_ref, o_ref, acc_ref = refs
        mask_ref = None

    f = pl.program_id(1)
    nf = pl.num_programs(1)

    # First linear: bf16 operands on the MXU, f32 accumulation; bias+ReLU in f32.
    h = jnp.dot(x_ref[...], w1_ref[...], preferred_element_type=jnp.float32)
    h = jnp.maximum(h + b1_ref[...], 0.0)

    if apply_dropout:
        # Keep-mask is {0,1}; the 1/keep_prob scale is applied at finalize.
        h = h * mask_ref[...].astype(jnp.float32)

    # Second linear: cast the f32 activation to the MXU dtype right before the dot.
    part = jnp.dot(h.astype(w2_ref.dtype), w2_ref[...],
                   preferred_element_type=jnp.float32)

    @pl.when(f == 0)
    def _first():
        acc_ref[...] = part          # skip the explicit zero-fill

    @pl.when(f > 0)
    def _accum():
        acc_ref[...] += part

    @pl.when(f == nf - 1)
    def _finish():
        out = acc_ref[...]
        if apply_dropout:
            out = out * inv_keep     # folded inverted-dropout scale
        o_ref[...] = (out + b2_ref[...]).astype(o_ref.dtype)


def _pad_dims(d_model, d_ff, tf):
    # 256-alignment feeds the 2x256x256 MXU on v6e/v7x (no effect on v5e),
    # and is lane-dense (multiple of 128) for unmasked stores.
    dm_pad = _round_up(d_model, 256)
    tf_eff = min(_round_up(tf, 256), _round_up(d_ff, 256))
    dff_pad = _round_up(d_ff, tf_eff)
    return dm_pad, tf_eff, dff_pad


def prepare_ffn_params(w1, b1, w2, b2, *, tf=1024, compute_dtype=jnp.bfloat16):
    """Hoisted weight prep: cast to the MXU dtype and zero-pad once, reuse per call."""
    d_model, d_ff = w1.shape
    assert w2.shape == (d_ff, d_model)
    dm_pad, tf_eff, dff_pad = _pad_dims(d_model, d_ff, tf)
    w1p = jnp.pad(w1.astype(compute_dtype),
                  ((0, dm_pad - d_model), (0, dff_pad - d_ff)))
    w2p = jnp.pad(w2.astype(compute_dtype),
                  ((0, dff_pad - d_ff), (0, dm_pad - d_model)))
    b1p = jnp.pad(b1.astype(jnp.float32), (0, dff_pad - d_ff)).reshape(1, dff_pad)
    b2p = jnp.pad(b2.astype(jnp.float32), (0, dm_pad - d_model)).reshape(1, dm_pad)
    return dict(w1=w1p, b1=b1p, w2=w2p, b2=b2p,
                d_model=d_model, d_ff=d_ff,
                dm_pad=dm_pad, tf_eff=tf_eff, dff_pad=dff_pad,
                compute_dtype=compute_dtype)


def feed_forward_block_prepared(x, params, *, dropout_rate=0.0, training=False,
                                rng=None, tm=512, vmem_limit_bytes=None):
    """x: (B, S, d_model) -> (B, S, d_model). `params` from prepare_ffn_params."""
    B, S, d_model = x.shape
    assert d_model == params["d_model"]
    assert 0.0 <= float(dropout_rate) <= 1.0
    d_ff = params["d_ff"]
    dm_pad, tf_eff, dff_pad = params["dm_pad"], params["tf_eff"], params["dff_pad"]
    cd = params["compute_dtype"]
    out_dtype = x.dtype
    M = B * S

    # Row tile: large (feeds the MXU, clears the HBM ridge vs. streamed weight
    # bytes), multiple of 8, clamped for tiny inputs.
    m8 = _round_up(M, 8)
    tm_eff = min(_round_up(tm, 8), m8)
    # Megacore (v7x has 2 TCs): keep >= 2 row tiles when M is large enough
    # that halving the tile still feeds the MXU well.
    if m8 >= 2 * 256:
        tm_eff = min(tm_eff, _round_up((m8 + 1) // 2, 8))
    m_pad = _round_up(M, tm_eff)

    # Zero-padding is mathematically a no-op here (padded rows/cols sliced off).
    x2 = jnp.pad(x.reshape(M, d_model).astype(cd),
                 ((0, m_pad - M), (0, dm_pad - d_model)))

    apply_dropout = bool(training) and float(dropout_rate) > 0.0
    keep_prob = 1.0 - float(dropout_rate)
    inv_keep = (1.0 / keep_prob) if keep_prob > 0.0 else 0.0

    inputs = [x2, params["w1"], params["b1"], params["w2"], params["b2"]]
    in_specs = [
        pl.BlockSpec((tm_eff, dm_pad), lambda i, f: (i, 0)),   # x rows
        pl.BlockSpec((dm_pad, tf_eff), lambda i, f: (0, f)),   # W1 slice
        pl.BlockSpec((1, tf_eff),      lambda i, f: (0, f)),   # b1 slice
        pl.BlockSpec((tf_eff, dm_pad), lambda i, f: (f, 0)),   # W2 slice
        pl.BlockSpec((1, dm_pad),      lambda i, f: (0, 0)),   # b2
    ]
    if apply_dropout:
        if rng is None:
            rng = jax.random.PRNGKey(0)
        keep = jax.random.bernoulli(rng, keep_prob, (M, d_ff))
        maskp = jnp.pad(keep.astype(cd), ((0, m_pad - M), (0, dff_pad - d_ff)))
        inputs.append(maskp)
        in_specs.append(pl.BlockSpec((tm_eff, tf_eff), lambda i, f: (i, f)))

    # VMEM budget from the actual double-buffered working set (+ f32 scratch
    # and in-kernel f32 h temporaries), with headroom — never blindly 64 MiB.
    if vmem_limit_bytes is None:
        bpe = jnp.dtype(cd).itemsize
        obpe = jnp.dtype(out_dtype).itemsize
        work = 2 * (tm_eff * dm_pad * bpe      # x tile
                    + dm_pad * tf_eff * bpe    # W1 slice
                    + tf_eff * 4               # b1 slice
                    + tf_eff * dm_pad * bpe    # W2 slice
                    + dm_pad * 4               # b2
                    + tm_eff * dm_pad * obpe)  # out tile
        if apply_dropout:
            work += 2 * tm_eff * tf_eff * bpe  # mask tile
        work += tm_eff * dm_pad * 4            # f32 accumulator scratch
        work += 2 * tm_eff * tf_eff * 4        # f32 h temporaries headroom
        vmem_limit_bytes = min(max(int(work * 1.25), 32 * 1024 * 1024),
                               100 * 1024 * 1024)

    kernel = functools.partial(_ffn_kernel, apply_dropout=apply_dropout,
                               inv_keep=inv_keep)
    grid = (m_pad // tm_eff, dff_pad // tf_eff)

    out2 = pl.pallas_call(
        kernel,
        out_shape=jax.ShapeDtypeStruct((m_pad, dm_pad), out_dtype),
        grid_spec=pltpu.PrefetchScalarGridSpec(
            num_scalar_prefetch=0,
            grid=grid,
            in_specs=in_specs,
            out_specs=pl.BlockSpec((tm_eff, dm_pad), lambda i, f: (i, 0)),
            scratch_shapes=[pltpu.VMEM((tm_eff, dm_pad), jnp.float32)],
        ),
        compiler_params=pltpu.CompilerParams(
            dimension_semantics=("parallel", "arbitrary"),
            vmem_limit_bytes=vmem_limit_bytes),
    )(*inputs)

    return out2[:M, :d_model].reshape(B, S, d_model)


def feed_forward_block(x, w1, b1, w2, b2, *, dropout_rate=0.0, training=False,
                       rng=None, tm=512, tf=1024, compute_dtype=jnp.bfloat16,
                       vmem_limit_bytes=None):
    """Convenience wrapper: prepare params (cast/pad) and run the kernel."""
    params = prepare_ffn_params(w1, b1, w2, b2, tf=tf, compute_dtype=compute_dtype)
    return feed_forward_block_prepared(x, params, dropout_rate=dropout_rate,
                                       training=training, rng=rng, tm=tm,
                                       vmem_limit_bytes=vmem_limit_bytes)


def _init_linear_params(key, fan_in, fan_out, dtype=jnp.float32):
    # Mimic torch.nn.Linear default init: U(-1/sqrt(fan_in), 1/sqrt(fan_in)).
    kw, kb = jax.random.split(key)
    bound = 1.0 / (fan_in ** 0.5)
    # Stored as (in, out) for row-major matmul in the kernel.
    w = jax.random.uniform(kw, (fan_in, fan_out), dtype, -bound, bound)
    b = jax.random.uniform(kb, (fan_out,), dtype, -bound, bound)
    return w, b


if __name__ == "__main__":
    batch, seq, d_model, d_ff = 2, 8, 32, 64
    dropout = 0.1

    key = jax.random.PRNGKey(0)
    kx, k1, k2, kd = jax.random.split(key, 4)

    x = jax.random.normal(kx, (batch, seq, d_model), jnp.float32)
    w1, b1 = _init_linear_params(k1, d_model, d_ff)
    w2, b2 = _init_linear_params(k2, d_ff, d_model)

    # Hoisted weight prep (bf16 cast + pad done once, reused across calls).
    params = prepare_ffn_params(w1, b1, w2, b2)

    # --- Eval mode (dropout is identity, matching nn.Dropout.eval()). ---
    out = feed_forward_block_prepared(x, params, dropout_rate=dropout,
                                      training=False)
    jax.block_until_ready(out)
    assert out.shape == (batch, seq, d_model)

    # Reference with the same bf16 MXU operands / f32 accumulation.
    cd = jnp.bfloat16
    x2 = x.reshape(-1, d_model)
    h_ref = jnp.maximum(
        jnp.dot(x2.astype(cd), w1.astype(cd),
                preferred_element_type=jnp.float32) + b1, 0.0)
    ref = (jnp.dot(h_ref.astype(cd), w2.astype(cd),
                   preferred_element_type=jnp.float32) + b2).reshape(x.shape)
    assert jnp.allclose(out, ref, atol=2e-2, rtol=2e-2), \
        float(jnp.max(jnp.abs(out - ref)))

    # --- Training mode: dropout with a reproducible jax.random mask. ---
    # TODO(synk): torch's RNG stream is not reproduced; mask comes from jax.random.
    out_tr = feed_forward_block_prepared(x, params, dropout_rate=dropout,
                                         training=True, rng=kd)
    jax.block_until_ready(out_tr)
    assert out_tr.shape == (batch, seq, d_model)

    keep_prob = 1.0 - dropout
    keep = jax.random.bernoulli(kd, keep_prob,
                                (batch * seq, d_ff)).astype(jnp.float32)
    h_drop = (h_ref * keep).astype(cd)
    ref_tr = (jnp.dot(h_drop, w2.astype(cd), preferred_element_type=jnp.float32)
              * (1.0 / keep_prob) + b2).reshape(x.shape)
    assert jnp.allclose(out_tr, ref_tr, atol=2e-2, rtol=2e-2), \
        float(jnp.max(jnp.abs(out_tr - ref_tr)))
    assert not bool(jnp.allclose(out_tr, out, atol=1e-4))  # dropout actually fired
    assert bool(jnp.all(jnp.isfinite(out_tr)))

    print("KERNEL_OK")
</pallas_src>

<mosaic_0001>
module attributes {stable_mosaic.version = 11 : i64} {
  func.func @_ffn_kernel(%arg0: i32, %arg1: i32, %arg2: memref<16x256xbf16, #tpu.memory_space<vmem>>, %arg3: memref<256x256xbf16, #tpu.memory_space<vmem>>, %arg4: memref<1x256xf32, #tpu.memory_space<vmem>>, %arg5: memref<256x256xbf16, #tpu.memory_space<vmem>>, %arg6: memref<1x256xf32, #tpu.memory_space<vmem>>, %arg7: memref<16x256xf32, #tpu.memory_space<vmem>>, %arg8: memref<16x256xf32, #tpu.memory_space<vmem>>) attributes {dimension_semantics = [#tpu.dimension_semantics<parallel>, #tpu.dimension_semantics<arbitrary>], iteration_bounds = array<i64: 1, 1>, scalar_prefetch = 0 : i64, scratch_operands = 1 : i64, tpu.core_type = #tpu.core_type<tc>, window_params = [{transform_indices = @transform_0, window_bounds = array<i64: 16, 256>}, {transform_indices = @transform_1, window_bounds = array<i64: 256, 256>}, {transform_indices = @transform_2, window_bounds = array<i64: 1, 256>}, {transform_indices = @transform_3, window_bounds = array<i64: 256, 256>}, {pipeline_mode = #tpu.pipeline_mode<synchronous>, transform_indices = @transform_4, window_bounds = array<i64: 1, 256>}, {transform_indices = @transform_5, window_bounds = array<i64: 16, 256>}]} {
    %c0 = arith.constant 0 : index
    %c0_0 = arith.constant 0 : index
    %0 = vector.load %arg2[%c0, %c0_0] : memref<16x256xbf16, #tpu.memory_space<vmem>>, vector<16x256xbf16>
    %c0_1 = arith.constant 0 : index
    %c0_2 = arith.constant 0 : index
    %1 = vector.load %arg3[%c0_1, %c0_2] : memref<256x256xbf16, #tpu.memory_space<vmem>>, vector<256x256xbf16>
    %cst = arith.constant dense<0.000000e+00> : vector<16x256xf32>
    %2 = tpu.matmul %0, %1, %cst {dimension_numbers = #tpu.dot_dimension_numbers<[1], [0], [0], [1], [0, 0, 1, 1], [], []>} : vector<16x256xbf16>, vector<256x256xbf16>, vector<16x256xf32> -> vector<16x256xf32>
    %c0_3 = arith.constant 0 : index
    %c0_4 = arith.constant 0 : index
    %3 = vector.load %arg4[%c0_3, %c0_4] : memref<1x256xf32, #tpu.memory_space<vmem>>, vector<1x256xf32>
    %4 = vector.broadcast %3 : vector<1x256xf32> to vector<16x256xf32>
    %5 = arith.addf %2, %4 : vector<16x256xf32>
    %cst_5 = arith.constant 0.000000e+00 : f32
    %6 = vector.broadcast %cst_5 : f32 to vector<16x256xf32>
    %7 = arith.maximumf %5, %6 : vector<16x256xf32>
    %8 = arith.truncf %7 : vector<16x256xf32> to vector<16x256xbf16>
    %c0_6 = arith.constant 0 : index
    %c0_7 = arith.constant 0 : index
    %9 = vector.load %arg5[%c0_6, %c0_7] : memref<256x256xbf16, #tpu.memory_space<vmem>>, vector<256x256xbf16>
    %cst_8 = arith.constant dense<0.000000e+00> : vector<16x256xf32>
    %10 = tpu.matmul %8, %9, %cst_8 {dimension_numbers = #tpu.dot_dimension_numbers<[1], [0], [0], [1], [0, 0, 1, 1], [], []>} : vector<16x256xbf16>, vector<256x256xbf16>, vector<16x256xf32> -> vector<16x256xf32>
    %c0_i32 = arith.constant 0 : i32
    %11 = arith.cmpi eq, %arg1, %c0_i32 : i32
    %12 = arith.extui %11 : i1 to i32
    %c0_i32_9 = arith.constant 0 : i32
    %13 = arith.cmpi ne, %12, %c0_i32_9 : i32
    scf.if %13 {
      %c0_14 = arith.constant 0 : index
      %c0_15 = arith.constant 0 : index
      %20 = vector.load %arg8[%c0_14, %c0_15] : memref<16x256xf32, #tpu.memory_space<vmem>>, vector<16x256xf32>
      tpu.vector_store %arg8[%c0_14, %c0_15], %10 {strides = array<i32>} : memref<16x256xf32, #tpu.memory_space<vmem>>, vector<16x256xf32>,
    } else {
    }
    %c0_i32_10 = arith.constant 0 : i32
    %14 = arith.cmpi sgt, %arg1, %c0_i32_10 : i32
    %15 = arith.extui %14 : i1 to i32
    %c0_i32_11 = arith.constant 0 : i32
    %16 = arith.cmpi ne, %15, %c0_i32_11 : i32
    scf.if %16 {
      %c0_14 = arith.constant 0 : index
      %c0_15 = arith.constant 0 : index
      %20 = vector.load %arg8[%c0_14, %c0_15] : memref<16x256xf32, #tpu.memory_space<vmem>>, vector<16x256xf32>
      %21 = arith.addf %20, %10 : vector<16x256xf32>
      %c0_16 = arith.constant 0 : index
      %c0_17 = arith.constant 0 : index
      %22 = vector.load %arg8[%c0_16, %c0_17] : memref<16x256xf32, #tpu.memory_space<vmem>>, vector<16x256xf32>
      tpu.vector_store %arg8[%c0_16, %c0_17], %21 {strides = array<i32>} : memref<16x256xf32, #tpu.memory_space<vmem>>, vector<16x256xf32>,
    } else {
    }
    %c0_i32_12 = arith.constant 0 : i32
    %17 = arith.cmpi eq, %arg1, %c0_i32_12 : i32
    %18 = arith.extui %17 : i1 to i32
    %c0_i32_13 = arith.constant 0 : i32
    %19 = arith.cmpi ne, %18, %c0_i32_13 : i32
    scf.if %19 {
      %c0_14 = arith.constant 0 : index
      %c0_15 = arith.constant 0 : index
      %20 = vector.load %arg8[%c0_14, %c0_15] : memref<16x256xf32, #tpu.memory_space<vmem>>, vector<16x256xf32>
      %c0_16 = arith.constant 0 : index
      %c0_17 = arith.constant 0 : index
      %21 = vector.load %arg6[%c0_16, %c0_17] : memref<1x256xf32, #tpu.memory_space<vmem>>, vector<1x256xf32>
      %22 = vector.broadcast %21 : vector<1x256xf32> to vector<16x256xf32>
      %23 = arith.addf %20, %22 : vector<16x256xf32>
      %c0_18 = arith.constant 0 : index
      %c0_19 = arith.constant 0 : index
      %24 = vector.load %arg7[%c0_18, %c0_19] : memref<16x256xf32, #tpu.memory_space<vmem>>, vector<16x256xf32>
      tpu.vector_store %arg7[%c0_18, %c0_19], %23 {strides = array<i32>} : memref<16x256xf32, #tpu.memory_space<vmem>>, vector<16x256xf32>,
    } else {
    }
    return
  }
  func.func @transform_0(%arg0: i32, %arg1: i32) -> (i32, i32) {
    %c0_i32 = arith.constant 0 : i32
    %c0_i32_0 = arith.constant 0 : i32
    return %arg0, %c0_i32 : i32, i32
  }
  func.func @transform_1(%arg0: i32, %arg1: i32) -> (i32, i32) {
    %c0_i32 = arith.constant 0 : i32
    %c0_i32_0 = arith.constant 0 : i32
    return %c0_i32, %arg1 : i32, i32
  }
  func.func @transform_2(%arg0: i32, %arg1: i32) -> (i32, i32) {
    %c0_i32 = arith.constant 0 : i32
    %c0_i32_0 = arith.constant 0 : i32
    return %c0_i32, %arg1 : i32, i32
  }
  func.func @transform_3(%arg0: i32, %arg1: i32) -> (i32, i32) {
    %c0_i32 = arith.constant 0 : i32
    %c0_i32_0 = arith.constant 0 : i32
    return %arg1, %c0_i32 : i32, i32
  }
  func.func @transform_4(%arg0: i32, %arg1: i32) -> (i32, i32) {
    %c0_i32 = arith.constant 0 : i32
    %c0_i32_0 = arith.constant 0 : i32
    %c0_i32_1 = arith.constant 0 : i32
    return %c0_i32, %c0_i32_0 : i32, i32
  }
  func.func @transform_5(%arg0: i32, %arg1: i32) -> (i32, i32) {
    %c0_i32 = arith.constant 0 : i32
    %c0_i32_0 = arith.constant 0 : i32
    return %arg0, %c0_i32 : i32, i32
  }
}

</mosaic_0001>

<bundles_post_ra>
// kernel: tpu_custom_call.1
= control target key start
LH: loop header
LB: loop body
LE: loop exit
PB: predicated region body
PF: predicated region fallthrough
CT: control target
= control target key end

     0   :  { %10 = vsyncpa [#allocation4], 0  ;;  %s1006_s0 = inlined_call_operand.hbm [shape: bf16[16,256], index: 0, kind: input, shape index: {}]   ;;  %s1007_s1 = inlined_call_operand.hbm [shape: bf16[256,256], index: 1, kind: input, shape index: {}]   ;;  %s1008_s2 = inlined_call_operand.vmem [shape: f32[1,256], index: 2, kind: input, shape index: {}]   ;;  %s1009_s3 = inlined_call_operand.hbm [shape: bf16[256,256], index: 3, kind: input, shape index: {}]   ;;  %s1010_s4 = inlined_call_operand.vmem [shape: f32[1,256], index: 4, kind: input, shape index: {}]   ;;  %s1011_s5 = inlined_call_operand.hbm [shape: f32[16,256], index: 5, kind: output, shape index: {}]  }
   0x1   :  { %11 = vsyncpa [#allocation7], 0 }
   0x2   :  { %12 = vsyncpa [#allocation5], 0  ;;  %s898_s18 = smov [#allocation6]   ;;  %s899_s20 = smov [#allocation3]  }
   0x3   :  { %s30_s19 = sshll.u32 %s898_s18, 4  ;;  %s18_s21 = sshll.u32 %s899_s20, 4  ;;  %s31_s19 = int_to_ptr.vmem [resolvable:$true] %s30_s19  ;;  %s936_s21 = int_to_ptr.vmem [resolvable:$true] %s18_s21 }
   0x4   :  { %s804_s24 = scalar_lea.hbm %s1007_s1, 4096 }
   0x5   :  { %p805_p0 = scmp.ne.s32.totalorder %s1007_s1, %s804_s24  ;;  %p808_p1 = scmp.lt.u32.totalorder %s804_s24, %s1007_s1 }
   0x7   :  { %p810_p2 = pnand %p808_p1, %p805_p0 }
   0x9   :  { %813 = shalt.err (!%p810_p2)
}
   0xa   :  { %s814_s29 = scalar_lea.vmem %s31_s19, 4096  ;;  %p819_p4 = scmp.lt.s32.totalorder %s31_s19, %s31_s19 }
   0xb   :  { %p815_p3 = scmp.ne.s32.totalorder %s31_s19, %s814_s29  ;;  %p820_p5 = scmp.lt.s32.totalorder %s814_s29, %s814_s29 }
   0xd   :  { %p821_p6 = por %p820_p5, %p819_p4 }
   0xf   :  { %p822_p7 = pnand %p821_p6, %p815_p3 }
  0x11   :  { %825 = shalt.err (!%p822_p7)
}
  0x12   :  { %s900_s30 = smov 128   ;;  %s901_s6 = smov 8  }
  0x13   :  { %36 = dma.hbm_to_vmem [thread:$0]  %s1007_s1, 4096, %s31_s19, [#allocation7], %s900_s30, %s900_s30, %s901_s6  }
  0x14   :  { %s826_s11 = scalar_lea.hbm %s1006_s0, 256 }
  0x15   :  { %p827_p8 = scmp.ne.s32.totalorder %s1006_s0, %s826_s11  ;;  %p830_p9 = scmp.lt.u32.totalorder %s826_s11, %s1006_s0 }
  0x17   :  { %p832_p10 = pnand %p830_p9, %p827_p8 }
  0x19   :  { %835 = shalt.err (!%p832_p10)
}
  0x1a   :  { %s836_s16 = scalar_lea.vmem %s936_s21, 256  ;;  %p841_p12 = scmp.lt.s32.totalorder %s936_s21, %s936_s21 }
  0x1b   :  { %p837_p11 = scmp.ne.s32.totalorder %s936_s21, %s836_s16  ;;  %p842_p13 = scmp.lt.s32.totalorder %s836_s16, %s836_s16 }
  0x1d   :  { %p843_p0 = por %p842_p13, %p841_p12 }
  0x1f   :  { %p844_p1 = pnand %p843_p0, %p837_p11 }
  0x21   :  { %847 = shalt.err (!%p844_p1)
}
  0x22   :  { %24 = dma.hbm_to_vmem [thread:$0]  %s1006_s0, 256, %s936_s21, [#allocation4], %s900_s30, %s900_s30, %s901_s6  }
  0x23   :  { %s902_s18 = smov [#allocation8]   ;;  %s848_s23 = scalar_lea.hbm %s1009_s3, 4096 }
  0x24   :  { %s44_s19 = sshll.u32 %s902_s18, 4  ;;  %p849_p2 = scmp.ne.s32.totalorder %s1009_s3, %s848_s23  ;;  %s45_s19 = int_to_ptr.vmem [resolvable:$true] %s44_s19 }
  0x25   :  { %p852_p3 = scmp.lt.u32.totalorder %s848_s23, %s1009_s3 }
  0x27   :  { %p854_p4 = pnand %p852_p3, %p849_p2 }
  0x29   :  { %857 = shalt.err (!%p854_p4)
}
  0x2a   :  { %s858_s28 = scalar_lea.vmem %s45_s19, 4096  ;;  %p863_p6 = scmp.lt.s32.totalorder %s45_s19, %s45_s19 }
  0x2b   :  { %p859_p5 = scmp.ne.s32.totalorder %s45_s19, %s858_s28  ;;  %p864_p7 = scmp.lt.s32.totalorder %s858_s28, %s858_s28 }
  0x2d   :  { %p865_p8 = por %p864_p7, %p863_p6 }
  0x2f   :  { %p866_p9 = pnand %p865_p8, %p859_p5 }
  0x31   :  { %869 = shalt.err (!%p866_p9)
}
  0x32   :  { %50 = dma.hbm_to_vmem [thread:$0]  %s1009_s3, 4096, %s45_s19, [#allocation7], %s900_s30, %s900_s30, %s901_s6  }
  0x33   :  { %892 = dma.done.wait [#allocation4], 256  }
  0x34   :  { %893 = vsyncadd [#allocation4], 4294967040 }
  0x35   :  { %894 = dma.done.wait [#allocation7], 8192  }
  0x36   :  { %895 = vsyncadd [#allocation7], 4294959104  ;;  %v705_v0 = vld [vmem:[#allocation6 + $0x4] ss:$8 sps:$4 sm:$0xff]   ;;  %v707_v1 = vld [vmem:[#allocation6] ss:$8 sps:$4 sm:$0xff]  }
  0x37   :  { %278 = vmatprep.subr.bf16.mxu0 %v705_v0  ;;  %v708_v2 = vld [vmem:[#allocation6 + $0x14] ss:$8 sps:$4 sm:$0xff]   ;;  %v710_v3 = vld [vmem:[#allocation6 + $0x10] ss:$8 sps:$4 sm:$0xff]   ;;  %v711_v4 = vld [vmem:[#allocation6 + $0x24] ss:$8 sps:$4 sm:$0xff]  }
  0x38   :  { %279 = vmatpush1.bf16.msra.mxu0 %v707_v1  ;;  %v713_v5 = vld [vmem:[#allocation6 + $0x20] ss:$8 sps:$4 sm:$0xff]   ;;  %v714_v6 = vld [vmem:[#allocation6 + $0x34] ss:$8 sps:$4 sm:$0xff]   ;;  %v716_v7 = vld [vmem:[#allocation6 + $0x30] ss:$8 sps:$4 sm:$0xff]  }
  0x39   :  { %280 = vmatprep.subr.bf16.mxu0 %v708_v2  ;;  %v717_v8 = vld [vmem:[#allocation6 + $0x44] ss:$8 sps:$4 sm:$0xff]   ;;  %v719_v9 = vld [vmem:[#allocation6 + $0x40] ss:$8 sps:$4 sm:$0xff]   ;;  %v720_v10 = vld [vmem:[#allocation6 + $0x54] ss:$8 sps:$4 sm:$0xff]   ;;  %v98_v2 = vlaneseq }
  0x3a   :  { %v722_v11 = vld [vmem:[#allocation6 + $0x50] ss:$8 sps:$4 sm:$0xff]   ;;  %v723_v12 = vld [vmem:[#allocation6 + $0x64] ss:$8 sps:$4 sm:$0xff]   ;;  %v725_v13 = vld [vmem:[#allocation6 + $0x60] ss:$8 sps:$4 sm:$0xff]  }
  0x3b   :  { %v726_v14 = vld [vmem:[#allocation6 + $0x74] ss:$8 sps:$4 sm:$0xff]   ;;  %v756_v16 = vld [vmem:[#allocation8 + $0x4] ss:$8 sps:$4 sm:$0xff]   ;;  %v758_v17 = vld [vmem:[#allocation8] ss:$8 sps:$4 sm:$0xff]  }
  0x3c   :  { %281 = vmatpush1.bf16.msra.mxu0 %v710_v3  ;;  %v755_v15 = vld [vmem:[#allocation3 + $0x4] ss:$8 sps:$4 sm:$0xff]   ;;  %519 = vmatprep.subr.bf16.mxu1 %v756_v16  ;;  %v761_v19 = vld [vmem:[#allocation8 + $0x10] ss:$8 sps:$4 sm:$0xff]   ;;  %v762_v21 = vld [vmem:[#allocation8 + $0x24] ss:$8 sps:$4 sm:$0xff]  }
  0x3d   :  { %282 = vmatprep.subr.bf16.mxu0 %v711_v4  ;;  %310 = vmatprep.mubr.bf16.mxu0 %v755_v15  ;;  %v759_v18 = vld [vmem:[#allocation8 + $0x14] ss:$8 sps:$4 sm:$0xff]   ;;  %v728_v20 = vld [vmem:[#allocation6 + $0x70] ss:$8 sps:$4 sm:$0xff]   ;;  %v729_v22 = vld [vmem:[#allocation6 + $0x84] ss:$8 sps:$4 sm:$0xff]  }
  0x3e   :  { %520 = vmatpush1.bf16.msra.mxu1 %v758_v17  ;;  %v764_v23 = vld [vmem:[#allocation8 + $0x20] ss:$8 sps:$4 sm:$0xff]   ;;  %v765_v25 = vld [vmem:[#allocation8 + $0x34] ss:$8 sps:$4 sm:$0xff]   ;;  %v767_v27 = vld [vmem:[#allocation8 + $0x30] ss:$8 sps:$4 sm:$0xff]  }
  0x3f   :  { %521 = vmatprep.subr.bf16.mxu1 %v759_v18  ;;  %v731_v24 = vld [vmem:[#allocation6 + $0x80] ss:$8 sps:$4 sm:$0xff]   ;;  %v732_v26 = vld [vmem:[#allocation6 + $0x94] ss:$8 sps:$4 sm:$0xff]   ;;  %v734_v28 = vld [vmem:[#allocation6 + $0x90] ss:$8 sps:$4 sm:$0xff]  }
  0x40   :  { %283 = vmatpush1.bf16.msra.mxu0 %v713_v5  ;;  %v768_v29 = vld [vmem:[#allocation8 + $0x44] ss:$8 sps:$4 sm:$0xff]   ;;  %v770_v31 = vld [vmem:[#allocation8 + $0x40] ss:$8 sps:$4 sm:$0xff]   ;;  %v771_v33 = vld [vmem:[#allocation8 + $0x54] ss:$8 sps:$4 sm:$0xff]  }
  0x41   :  { %284 = vmatprep.subr.bf16.mxu0 %v714_v6  ;;  %v735_v30 = vld [vmem:[#allocation6 + $0xa4] ss:$8 sps:$4 sm:$0xff]   ;;  %v737_v32 = vld [vmem:[#allocation6 + $0xa0] ss:$8 sps:$4 sm:$0xff]   ;;  %v738_v34 = vld [vmem:[#allocation6 + $0xb4] ss:$8 sps:$4 sm:$0xff]  }
  0x42   :  { %522 = vmatpush1.bf16.msra.mxu1 %v761_v19  ;;  %v773_v35 = vld [vmem:[#allocation8 + $0x50] ss:$8 sps:$4 sm:$0xff]   ;;  %v774_v37 = vld [vmem:[#allocation8 + $0x64] ss:$8 sps:$4 sm:$0xff]   ;;  %v776_v39 = vld [vmem:[#allocation8 + $0x60] ss:$8 sps:$4 sm:$0xff]  }
  0x43   :  { %523 = vmatprep.subr.bf16.mxu1 %v762_v21  ;;  %v740_v36 = vld [vmem:[#allocation6 + $0xb0] ss:$8 sps:$4 sm:$0xff]   ;;  %v741_v38 = vld [vmem:[#allocation6 + $0xc4] ss:$8 sps:$4 sm:$0xff]   ;;  %v743_v40 = vld [vmem:[#allocation6 + $0xc0] ss:$8 sps:$4 sm:$0xff]  }
  0x44   :  { %285 = vmatpush1.bf16.msra.mxu0 %v716_v7  ;;  %v777_v41 = vld [vmem:[#allocation8 + $0x74] ss:$8 sps:$4 sm:$0xff]   ;;  %v779_v43 = vld [vmem:[#allocation8 + $0x70] ss:$8 sps:$4 sm:$0xff]   ;;  %v780_v45 = vld [vmem:[#allocation8 + $0x84] ss:$8 sps:$4 sm:$0xff]  }
  0x45   :  { %286 = vmatprep.subr.bf16.mxu0 %v717_v8  ;;  %v744_v42 = vld [vmem:[#allocation6 + $0xd4] ss:$8 sps:$4 sm:$0xff]   ;;  %v746_v44 = vld [vmem:[#allocation6 + $0xd0] ss:$8 sps:$4 sm:$0xff]   ;;  %v747_v46 = vld [vmem:[#allocation6 + $0xe4] ss:$8 sps:$4 sm:$0xff]  }
  0x46   :  { %524 = vmatpush1.bf16.msra.mxu1 %v764_v23  ;;  %v782_v47 = vld [vmem:[#allocation8 + $0x80] ss:$8 sps:$4 sm:$0xff]   ;;  %v783_v49 = vld [vmem:[#allocation8 + $0x94] ss:$8 sps:$4 sm:$0xff]   ;;  %v785_v51 = vld [vmem:[#allocation8 + $0x90] ss:$8 sps:$4 sm:$0xff]  }
  0x47   :  { %525 = vmatprep.subr.bf16.mxu1 %v765_v25  ;;  %v749_v48 = vld [vmem:[#allocation6 + $0xe0] ss:$8 sps:$4 sm:$0xff]   ;;  %v750_v50 = vld [vmem:[#allocation6 + $0xf4] ss:$8 sps:$4 sm:$0xff]   ;;  %v752_v52 = vld [vmem:[#allocation6 + $0xf0] ss:$8 sps:$4 sm:$0xff]  }
  0x48   :  { %287 = vmatpush1.bf16.msra.mxu0 %v719_v9  ;;  %v786_v53 = vld [vmem:[#allocation8 + $0xa4] ss:$8 sps:$4 sm:$0xff]   ;;  %v753_v54 = vld [vmem:[#allocation3] ss:$8 sps:$4 sm:$0xff]   ;;  %v788_v55 = vld [vmem:[#allocation8 + $0xa0] ss:$8 sps:$4 sm:$0xff]  }
  0x49   :  { %288 = vmatprep.subr.bf16.mxu0 %v720_v10  ;;  %v789_v56 = vld [vmem:[#allocation8 + $0xb4] ss:$8 sps:$4 sm:$0xff]   ;;  %v791_v57 = vld [vmem:[#allocation8 + $0xb0] ss:$8 sps:$4 sm:$0xff]   ;;  %v792_v58 = vld [vmem:[#allocation8 + $0xc4] ss:$8 sps:$4 sm:$0xff]  }
  0x4a   :  { %526 = vmatpush1.bf16.msra.mxu1 %v767_v27  ;;  %v794_v59 = vld [vmem:[#allocation8 + $0xc0] ss:$8 sps:$4 sm:$0xff]   ;;  %v795_v60 = vld [vmem:[#allocation8 + $0xd4] ss:$8 sps:$4 sm:$0xff]   ;;  %v797_v61 = vld [vmem:[#allocation8 + $0xd0] ss:$8 sps:$4 sm:$0xff]  }
  0x4b   :  { %527 = vmatprep.subr.bf16.mxu1 %v768_v29  ;;  %v798_v62 = vld [vmem:[#allocation8 + $0xe4] ss:$8 sps:$4 sm:$0xff]   ;;  %v800_v63 = vld [vmem:[#allocation8 + $0xe0] ss:$8 sps:$4 sm:$0xff]   ;;  %v801_v0 = vld [vmem:[#allocation8 + $0xf4] ss:$8 sps:$4 sm:$0xff]  }
  0x4c   :  { %289 = vmatpush1.bf16.msra.mxu0 %v722_v11  ;;  %v803_v1 = vld [vmem:[#allocation8 + $0xf0] ss:$8 sps:$4 sm:$0xff]   ;;  %v99_v3 = vshrl.u32 %v98_v2, 7  ;;  %s903_s6 = smov [#allocation9]  }
  0x4d   :  { %290 = vmatprep.subr.bf16.mxu0 %v723_v12  ;;  %v96_v5 = vld [vmem:[%s1008_s2] sm:$0x3]  ;;  %s618_s7 = sshll.u32 %s903_s6, 4  ;;  %s619_s7 = int_to_ptr.vmem [resolvable:$true] %s618_s7 }
  0x4e   :  { %528 = vmatpush1.bf16.msra.mxu1 %v770_v31  ;;  %v100_v4 = vsub.s32 0, %v99_v3  ;;  %v104_v6 = vsub.s32 1, %v99_v3  ;;  %v593_v23 = vld [vmem:[%s1010_s4] sm:$0x3]  ;;  %s870_s8 = scalar_lea.vmem %s619_s7, 512  ;;  %p875_p11 = scmp.lt.s32.totalorder %s619_s7, %s619_s7 }
  0x4f   :  { %529 = vmatprep.subr.bf16.mxu1 %v771_v33  ;;  %p871_p10 = scmp.ne.s32.totalorder %s619_s7, %s870_s8  ;;  %p876_p12 = scmp.lt.s32.totalorder %s870_s8, %s870_s8 }
  0x50   :  { %291 = vmatpush1.bf16.msra.mxu0 %v725_v13  ;;  %v101_v7 = vrot.slane %v96_v5, %v100_v4  ;;  %v105_v8 = vrot.slane %v96_v5, %v104_v6  ;;  %v602_v25 = vrot.slane %v593_v23, %v104_v6 }
  0x51   :  { %292 = vmatprep.subr.bf16.mxu0 %v726_v14  ;;  %p877_p13 = por %p876_p12, %p875_p11 }
  0x52   :  { %530 = vmatpush1.bf16.msra.mxu1 %v773_v35 }
  0x53   :  { %531 = vmatprep.subr.bf16.mxu1 %v774_v37  ;;  %p878_p0 = pnand %p877_p13, %p871_p10 }
  0x54   :  { %293 = vmatpush1.bf16.msra.mxu0 %v728_v20 }
  0x55   :  { %294 = vmatprep.subr.bf16.mxu0 %v729_v22 }
  0x56   :  { %532 = vmatpush1.bf16.msra.mxu1 %v776_v39 }
  0x57   :  { %533 = vmatprep.subr.bf16.mxu1 %v777_v41 }
  0x58   :  { %295 = vmatpush1.bf16.msra.mxu0 %v731_v24  ;;  %v598_v24 = vrot.slane %v593_v23, %v100_v4 }
  0x59   :  { %296 = vmatprep.subr.bf16.mxu0 %v732_v26 }
  0x5a   :  { %534 = vmatpush1.bf16.msra.mxu1 %v779_v43 }
  0x5b   :  { %535 = vmatprep.subr.bf16.mxu1 %v780_v45 }
  0x5c   :  { %297 = vmatpush1.bf16.msra.mxu0 %v734_v28 }
  0x5d   :  { %298 = vmatprep.subr.bf16.mxu0 %v735_v30 }
  0x5e   :  { %536 = vmatpush1.bf16.msra.mxu1 %v782_v47 }
  0x5f   :  { %537 = vmatprep.subr.bf16.mxu1 %v783_v49 }
  0x60   :  { %299 = vmatpush1.bf16.msra.mxu0 %v737_v32 }
  0x61   :  { %300 = vmatprep.subr.bf16.mxu0 %v738_v34 }
  0x62   :  { %538 = vmatpush1.bf16.msra.mxu1 %v785_v51 }
  0x63   :  { %539 = vmatprep.subr.bf16.mxu1 %v786_v53 }
  0x64   :  { %301 = vmatpush1.bf16.msra.mxu0 %v740_v36 }
  0x65   :  { %302 = vmatprep.subr.bf16.mxu0 %v741_v38 }
  0x66   :  { %540 = vmatpush1.bf16.msra.mxu1 %v788_v55 }
  0x67   :  { %541 = vmatprep.subr.bf16.mxu1 %v789_v56 }
  0x68   :  { %303 = vmatpush1.bf16.msra.mxu0 %v743_v40 }
  0x69   :  { %304 = vmatprep.subr.bf16.mxu0 %v744_v42 }
  0x6a   :  { %542 = vmatpush1.bf16.msra.mxu1 %v791_v57 }
  0x6b   :  { %543 = vmatprep.subr.bf16.mxu1 %v792_v58 }
  0x6c   :  { %305 = vmatpush1.bf16.msra.mxu0 %v746_v44 }
  0x6d   :  { %306 = vmatprep.subr.bf16.mxu0 %v747_v46 }
  0x6e   :  { %544 = vmatpush1.bf16.msra.mxu1 %v794_v59 }
  0x6f   :  { %545 = vmatprep.subr.bf16.mxu1 %v795_v60 }
  0x70   :  { %307 = vmatpush1.bf16.msra.mxu0 %v749_v48 }
  0x71   :  { %308 = vmatprep.subr.bf16.mxu0 %v750_v50 }
  0x72   :  { %546 = vmatpush1.bf16.msra.mxu1 %v797_v61 }
  0x73   :  { %547 = vmatprep.subr.bf16.mxu1 %v798_v62 }
  0x74   :  { %309 = vmatpush1.bf16.msra.mxu0 %v752_v52 }
  0x76   :  { %548 = vmatpush1.bf16.msra.mxu1 %v800_v63 }
  0x77   :  { %311 = vmatmul.mubr.bf16.vlgmr.msra.gmra.mrb[0].mxu0 %v753_v54  ;;  %549 = vmatprep.subr.bf16.mxu1 %v801_v0 }
  0x7a   :  { %550 = vmatpush1.bf16.msra.mxu1 %v803_v1 }
 0x14a   :  { %v312_v9 = vpop.f32.mrb[0].mxu0 }
 0x14b   :  { %v313_v10 = vadd.f32 %v312_v9, %v101_v7  ;;  %v314_v11 = vpop.f32.mrb[1].mxu0 }
 0x14c   :  { %v315_v12 = vadd.f32 %v314_v11, %v105_v8  ;;  %v316_v13 = vpop.f32.mrb[2].mxu0 }
 0x14d   :  { %v317_v14 = vadd.f32 %v316_v13, %v101_v7  ;;  %v318_v15 = vpop.f32.mrb[3].mxu0  ;;  %v321_v17 = vmax.f32 %v313_v10, 0.0 }
 0x14e   :  { %v319_v16 = vadd.f32 %v318_v15, %v105_v8  ;;  %v322_v19 = vmax.f32 %v315_v12, 0.0 }
 0x14f   :  { %v323_v18 = vmax.f32 %v317_v14, 0.0 }
 0x150   :  { %v324_v20 = vmax.f32 %v319_v16, 0.0 }
 0x151   :  { %v325_v21 = vpack.c.bf16 %v323_v18, %v321_v17 }
 0x152   :  { %v326_v22 = vpack.c.bf16 %v324_v20, %v322_v19 }
 0x154   :  { %551 = vmatprep.mubr.bf16.mxu1 %v326_v22 }
 0x155   :  { %552 = vmatmul.mubr.bf16.vlgmr.msra.gmra.mrb[0].mxu1 %v325_v21 }
 0x228   :  { %v553_v26 = vpop.f32.mrb[0].mxu1 }
 0x229   :  { %v605_v27 = vadd.f32 %v598_v24, %v553_v26  ;;  %v555_v28 = vpop.f32.mrb[1].mxu1 }
 0x22a   :  { %v606_v29 = vadd.f32 %v602_v25, %v555_v28  ;;  %v557_v30 = vpop.f32.mrb[2].mxu1 }
 0x22b   :  { %609 = vst [vmem:[#allocation9] sm:$0xff] %v605_v27  ;;  %v607_v31 = vadd.f32 %v598_v24, %v557_v30  ;;  %v559_v32 = vpop.f32.mrb[3].mxu1 }
 0x22c   :  { %610 = vst [vmem:[#allocation9 + $0x8] sm:$0xff] %v606_v29  ;;  %v608_v33 = vadd.f32 %v602_v25, %v559_v32 }
 0x22d   :  { %611 = vst [vmem:[#allocation9 + $0x10] sm:$0xff] %v607_v31 }
 0x22e   :  { %612 = vst [vmem:[#allocation9 + $0x18] sm:$0xff] %v608_v33 }
 0x22f   :  { %881 = shalt.err (!%p878_p0)
}
 0x230   :  { %s882_s10 = scalar_lea.hbm %s1011_s5, 512 }
 0x231   :  { %p883_p1 = scmp.ne.s32.totalorder %s1011_s5, %s882_s10  ;;  %p886_p2 = scmp.lt.u32.totalorder %s882_s10, %s1011_s5 }
 0x233   :  { %p888_p3 = pnand %p886_p2, %p883_p1 }
 0x235   :  { %891 = shalt.err (!%p888_p3)
}
 0x236   :  { %s904_s15 = smov 256   ;;  %s905_s16 = smov 16  }
 0x237   :  { %624 = dma.vmem_to_hbm [thread:$0]  %s619_s7, 512, %s1011_s5, [#allocation5], %s904_s15, %s904_s15, %s905_s16  }
 0x238   :  { %896 = dma.done.wait [#allocation5], 512  }
 0x239   :  { %897 = vsyncadd [#allocation5], 4294966784 }
 0x23a   :  { %628 = vsyncpa [#allocation4], 1 }
 0x23b   :  { %629 = vsyncpa [#allocation7], 1 }
 0x23c   :  { %630 = vsyncpa [#allocation5], 1 }

</bundles_post_ra>
